<compile_context>
chip_gen: v6e
topology: v6e:2x2x1
jax: 0.10.0
libtpu: 0.0.40
codegen_flags: <defaults>
</compile_context>

<pallas_src>
import functools

import jax
import jax.numpy as jnp
from jax.experimental import pallas as pl
from jax.experimental.pallas import tpu as pltpu

BN_EPS = 1e-5


def _round_up(v, m):
    return (v + m - 1) // m * m


def _heu_kernel(num_hidden, x_ref, *refs):
    """Fused MLP + argmax kernel.

    x_ref : (TILE_B, F) bf16 — natural batch-major layout.
    refs  : [w_1, b_1, ..., w_L, b_L, w_out, b_out, out_ref]
      w   : (N_l, K_l) bf16   (BatchNorm folded in)
      b   : (N_l, 1)   f32
      out : (1, TILE_B) int32 (lane-dense argmax row)
    """
    out_ref = refs[-1]
    params = refs[:-1]
    n_layers = num_hidden + 1

    h = None
    logits = None
    for li in range(n_layers):
        w = params[2 * li][...]        # (N, K) bf16
        b = params[2 * li + 1][...]    # (N, 1) f32
        if li == 0:
            # Contract the feature axis of both operands: (N,K) x (TILE_B,K)
            # -> (N, TILE_B).  Batch lands on lanes; MXU handles the operand
            # feed, no explicit transpose of x needed.
            z = jax.lax.dot_general(
                w, x_ref[...], (((1,), (1,)), ((), ())),
                preferred_element_type=jnp.float32)
        else:
            z = jnp.dot(w, h, preferred_element_type=jnp.float32)
        z = z + b                       # f32 bias add
        if li < num_hidden:
            # Tanh on the EUP in f32, then keep the activation in bf16.
            h = jnp.tanh(z).astype(w.dtype)
            # Dropout: identity in eval mode.
            # TODO(synk): training-mode dropout (pltpu.prng_* mask) not emitted.
        else:
            logits = z                  # (N_out, TILE_B) f32

    # argmax over the feature (sublane) axis -> lane-dense (1, TILE_B) row.
    # First-maximal index via iota + min (f32 indices < 2^24 are exact).
    m = jnp.max(logits, axis=0, keepdims=True)
    row = jax.lax.broadcasted_iota(jnp.int32, logits.shape, 0).astype(jnp.float32)
    sentinel = jnp.float32(logits.shape[0])
    idx = jnp.min(jnp.where(logits == m, row, sentinel), axis=0, keepdims=True)
    out_ref[...] = idx.astype(jnp.int32)


def init_heu_params(key, input_size, output_size, layer_sizes):
    """Raw parameters in PyTorch layout: W (out, in), b/gamma/beta/mean/var (out,)."""
    params = []
    old = input_size
    for layer in layer_sizes:
        key, kw, kb = jax.random.split(key, 3)
        bound = 1.0 / float(old) ** 0.5
        w = jax.random.uniform(kw, (layer, old), jnp.float32, -bound, bound)
        b = jax.random.uniform(kb, (layer,), jnp.float32, -bound, bound)
        gamma = jnp.ones((layer,), jnp.float32)
        beta = jnp.zeros((layer,), jnp.float32)
        mean = jnp.zeros((layer,), jnp.float32)   # fresh BatchNorm running stats
        var = jnp.ones((layer,), jnp.float32)
        params += [w, b, gamma, beta, mean, var]
        old = layer
    key, kw, kb = jax.random.split(key, 3)
    bound = 1.0 / float(old) ** 0.5
    w = jax.random.uniform(kw, (output_size, old), jnp.float32, -bound, bound)
    b = jax.random.uniform(kb, (output_size,), jnp.float32, -bound, bound)
    params += [w, b]
    return params


def fold_heu_params(raw_params, num_hidden, weight_dtype=jnp.bfloat16):
    """Host-side inference folding: BatchNorm into the preceding Linear.

    Returns [W'_1, b'_1, ..., W'_L, b'_L, W_out, b_out] with W in (out, in)
    layout cast to `weight_dtype` and biases as f32 (out, 1) columns.
    """
    fused = []
    p = 0
    for _ in range(num_hidden):
        w, b, gamma, beta, mean, var = raw_params[p:p + 6]
        p += 6
        scale = gamma * jax.lax.rsqrt(var + BN_EPS)                  # (N,)
        fused.append((w * scale[:, None]).astype(weight_dtype))      # (N, K)
        fused.append(((b - mean) * scale + beta).astype(jnp.float32)[:, None])
    w, b = raw_params[p], raw_params[p + 1]
    fused.append(w.astype(weight_dtype))
    fused.append(b.astype(jnp.float32)[:, None])
    return fused


def heu_forward(x, fused_params, num_hidden, tile_b=None):
    """Run the fused Heu kernel. x: [B, F] (any float dtype) -> [B] int32."""
    batch, feat = x.shape
    # Halve the dominant (activation) HBM stream; numerics unchanged since the
    # kernel feeds bf16 into the MXU anyway with f32 accumulation.
    x = x.astype(jnp.bfloat16)

    # Tile selection: fewest/largest tiles (each grid step costs ~0.35us of
    # serial overhead on v5e/v6e); when splitting is needed, keep the tile
    # count even so v7x's two TensorCores share the "parallel" axis evenly.
    b128 = _round_up(batch, 128)
    if tile_b is None:
        max_tile = 1024
        n_tiles = pl.cdiv(b128, max_tile)
        if n_tiles > 1 and n_tiles % 2:
            n_tiles += 1
        tile_b = _round_up(pl.cdiv(b128, n_tiles), 128)
    else:
        tile_b = max(128, _round_up(tile_b, 128))
    n_tiles = pl.cdiv(batch, tile_b)
    b_pad = n_tiles * tile_b          # only the output row is padded (int32)

    grid = (n_tiles,)
    # x in natural [B, F] layout; the last (partial) tile may read unspecified
    # rows past `batch` — those columns are sliced off after the call.
    in_specs = [pl.BlockSpec((tile_b, feat), lambda i: (i, 0))]
    # Folded weights/biases: full-array blocks with a constant index_map ->
    # DMA'd once, VMEM-resident across the batch grid.  (For much larger
    # hidden sizes on v7x, use pipeline_mode=pl.Buffered(1) here and set
    # vmem_limit_bytes explicitly.)
    for p in fused_params:
        in_specs.append(pl.BlockSpec(p.shape, lambda i: (0, 0)))
    out_specs = pl.BlockSpec((1, tile_b), lambda i: (0, i))

    # Advisory cost estimate so XLA can schedule/overlap this small call.
    flops = 0
    transcendentals = 0
    for li in range(num_hidden + 1):
        w = fused_params[2 * li]
        flops += 2 * b_pad * w.shape[0] * w.shape[1]
        if li < num_hidden:
            transcendentals += b_pad * w.shape[0]
    bytes_accessed = (x.size * x.dtype.itemsize
                      + sum(q.size * q.dtype.itemsize for q in fused_params)
                      + b_pad * 4)

    out = pl.pallas_call(
        functools.partial(_heu_kernel, num_hidden),
        out_shape=jax.ShapeDtypeStruct((1, b_pad), jnp.int32),
        grid=grid,
        in_specs=in_specs,
        out_specs=out_specs,
        compiler_params=pltpu.CompilerParams(dimension_semantics=("parallel",)),
        cost_estimate=pl.CostEstimate(flops=flops,
                                      transcendentals=transcendentals,
                                      bytes_accessed=bytes_accessed),
    )(x, *fused_params)
    return out[0, :batch]


def heu_reference(x, fused_params, num_hidden):
    """Pure-JAX reference with the same numerics as the kernel.

    Returns logits of shape (output_size, B).
    """
    h = x.astype(jnp.bfloat16)                               # (B, F)
    logits = None
    for li in range(num_hidden + 1):
        w, b = fused_params[2 * li], fused_params[2 * li + 1]
        if li == 0:
            z = jax.lax.dot_general(w, h, (((1,), (1,)), ((), ())),
                                    preferred_element_type=jnp.float32) + b
        else:
            z = jnp.dot(w, h, preferred_element_type=jnp.float32) + b
        if li < num_hidden:
            h = jnp.tanh(z).astype(w.dtype)
        else:
            logits = z
    return logits


if __name__ == "__main__":
    input_size = 32
    output_size = 16
    layer_sizes = [64, 32]
    batch = 300          # exercises a single 384-wide tile with a ragged tail

    key = jax.random.PRNGKey(0)
    key, kx = jax.random.split(key)
    x = jax.random.normal(kx, (batch, input_size), jnp.float32)

    raw = init_heu_params(key, input_size, output_size, layer_sizes)
    fused = fold_heu_params(raw, num_hidden=len(layer_sizes))

    out = heu_forward(x, fused, num_hidden=len(layer_sizes))
    out = jax.block_until_ready(out)
    assert out.shape == (batch,)

    ref_logits = heu_reference(x, fused, num_hidden=len(layer_sizes))   # (N_out, B)
    ref_idx = jnp.argmax(ref_logits, axis=0).astype(jnp.int32)
    assert bool(jnp.all((out >= 0) & (out < output_size))), out
    # Robust check: kernel index must be a (near-)maximal logit per column
    # (exact match expected; the tolerance only guards float near-ties).
    picked = jnp.take_along_axis(ref_logits, out[None, :], axis=0)[0]
    ok = (out == ref_idx) | (picked >= ref_logits.max(axis=0) - 1e-4)
    assert bool(jnp.all(ok)), (out, ref_idx)

    print("KERNEL_OK")
</pallas_src>

<mosaic_0001>
module attributes {stable_mosaic.version = 11 : i64} {
  func.func @_heu_kernel(%arg0: i32, %arg1: memref<384x32xbf16, #tpu.memory_space<vmem>>, %arg2: memref<64x32xbf16, #tpu.memory_space<vmem>>, %arg3: memref<64x1xf32, #tpu.memory_space<vmem>>, %arg4: memref<32x64xbf16, #tpu.memory_space<vmem>>, %arg5: memref<32x1xf32, #tpu.memory_space<vmem>>, %arg6: memref<16x32xbf16, #tpu.memory_space<vmem>>, %arg7: memref<16x1xf32, #tpu.memory_space<vmem>>, %arg8: memref<1x384xi32, #tpu.memory_space<vmem>>) attributes {dimension_semantics = [#tpu.dimension_semantics<parallel>], iteration_bounds = array<i64: 1>, scalar_prefetch = 0 : i64, scratch_operands = 0 : i64, tpu.core_type = #tpu.core_type<tc>, window_params = [{transform_indices = @transform_0, window_bounds = array<i64: 384, 32>}, {pipeline_mode = #tpu.pipeline_mode<synchronous>, transform_indices = @transform_1, window_bounds = array<i64: 64, 32>}, {pipeline_mode = #tpu.pipeline_mode<synchronous>, transform_indices = @transform_2, window_bounds = array<i64: 64, 1>}, {pipeline_mode = #tpu.pipeline_mode<synchronous>, transform_indices = @transform_3, window_bounds = array<i64: 32, 64>}, {pipeline_mode = #tpu.pipeline_mode<synchronous>, transform_indices = @transform_4, window_bounds = array<i64: 32, 1>}, {pipeline_mode = #tpu.pipeline_mode<synchronous>, transform_indices = @transform_5, window_bounds = array<i64: 16, 32>}, {pipeline_mode = #tpu.pipeline_mode<synchronous>, transform_indices = @transform_6, window_bounds = array<i64: 16, 1>}, {transform_indices = @transform_7, window_bounds = array<i64: 1, 384>}]} {
    %c0 = arith.constant 0 : index
    %c0_0 = arith.constant 0 : index
    %0 = vector.load %arg2[%c0, %c0_0] : memref<64x32xbf16, #tpu.memory_space<vmem>>, vector<64x32xbf16>
    %c0_1 = arith.constant 0 : index
    %c0_2 = arith.constant 0 : index
    %1 = vector.load %arg3[%c0_1, %c0_2] : memref<64x1xf32, #tpu.memory_space<vmem>>, vector<64x1xf32>
    %c0_3 = arith.constant 0 : index
    %c0_4 = arith.constant 0 : index
    %2 = vector.load %arg1[%c0_3, %c0_4] : memref<384x32xbf16, #tpu.memory_space<vmem>>, vector<384x32xbf16>
    %cst = arith.constant dense<0.000000e+00> : vector<64x384xf32>
    %3 = tpu.matmul %0, %2, %cst {dimension_numbers = #tpu.dot_dimension_numbers<[1], [1], [0], [0], [0, 0, 1, 0], [], []>} : vector<64x32xbf16>, vector<384x32xbf16>, vector<64x384xf32> -> vector<64x384xf32>
    %4 = vector.broadcast %1 : vector<64x1xf32> to vector<64x384xf32>
    %5 = arith.addf %3, %4 : vector<64x384xf32>
    %6 = math.tanh %5 : vector<64x384xf32>
    %7 = arith.truncf %6 : vector<64x384xf32> to vector<64x384xbf16>
    %c0_5 = arith.constant 0 : index
    %c0_6 = arith.constant 0 : index
    %8 = vector.load %arg4[%c0_5, %c0_6] : memref<32x64xbf16, #tpu.memory_space<vmem>>, vector<32x64xbf16>
    %c0_7 = arith.constant 0 : index
    %c0_8 = arith.constant 0 : index
    %9 = vector.load %arg5[%c0_7, %c0_8] : memref<32x1xf32, #tpu.memory_space<vmem>>, vector<32x1xf32>
    %cst_9 = arith.constant dense<0.000000e+00> : vector<32x384xf32>
    %10 = tpu.matmul %8, %7, %cst_9 {dimension_numbers = #tpu.dot_dimension_numbers<[1], [0], [0], [1], [0, 0, 1, 1], [], []>} : vector<32x64xbf16>, vector<64x384xbf16>, vector<32x384xf32> -> vector<32x384xf32>
    %11 = vector.broadcast %9 : vector<32x1xf32> to vector<32x384xf32>
    %12 = arith.addf %10, %11 : vector<32x384xf32>
    %13 = math.tanh %12 : vector<32x384xf32>
    %14 = arith.truncf %13 : vector<32x384xf32> to vector<32x384xbf16>
    %c0_10 = arith.constant 0 : index
    %c0_11 = arith.constant 0 : index
    %15 = vector.load %arg6[%c0_10, %c0_11] : memref<16x32xbf16, #tpu.memory_space<vmem>>, vector<16x32xbf16>
    %c0_12 = arith.constant 0 : index
    %c0_13 = arith.constant 0 : index
    %16 = vector.load %arg7[%c0_12, %c0_13] : memref<16x1xf32, #tpu.memory_space<vmem>>, vector<16x1xf32>
    %cst_14 = arith.constant dense<0.000000e+00> : vector<16x384xf32>
    %17 = tpu.matmul %15, %14, %cst_14 {dimension_numbers = #tpu.dot_dimension_numbers<[1], [0], [0], [1], [0, 0, 1, 1], [], []>} : vector<16x32xbf16>, vector<32x384xbf16>, vector<16x384xf32> -> vector<16x384xf32>
    %18 = vector.broadcast %16 : vector<16x1xf32> to vector<16x384xf32>
    %19 = arith.addf %17, %18 : vector<16x384xf32>
    %cst_15 = arith.constant dense<0xFF800000> : vector<384xf32>
    %20 = vector.multi_reduction <maximumf>, %19, %cst_15 [0] : vector<16x384xf32> to vector<384xf32>
    %21 = vector.shape_cast %20 : vector<384xf32> to vector<1x384xf32>
    %22 = tpu.iota {dimensions = array<i32: 0>} : vector<16x384xi32>
    %23 = arith.sitofp %22 : vector<16x384xi32> to vector<16x384xf32>
    %24 = vector.broadcast %21 : vector<1x384xf32> to vector<16x384xf32>
    %25 = arith.cmpf oeq, %19, %24 : vector<16x384xf32>
    %cst_16 = arith.constant 1.600000e+01 : f32
    %26 = vector.broadcast %cst_16 : f32 to vector<16x384xf32>
    %27 = arith.select %25, %23, %26 : vector<16x384xi1>, vector<16x384xf32>
    %cst_17 = arith.constant dense<0x7F800000> : vector<384xf32>
    %28 = vector.multi_reduction <minimumf>, %27, %cst_17 [0] : vector<16x384xf32> to vector<384xf32>
    %29 = vector.shape_cast %28 : vector<384xf32> to vector<1x384xf32>
    %30 = arith.fptosi %29 : vector<1x384xf32> to vector<1x384xi32>
    %c0_18 = arith.constant 0 : index
    %c0_19 = arith.constant 0 : index
    %31 = vector.load %arg8[%c0_18, %c0_19] : memref<1x384xi32, #tpu.memory_space<vmem>>, vector<1x384xi32>
    tpu.vector_store %arg8[%c0_18, %c0_19], %30 {strides = array<i32>} : memref<1x384xi32, #tpu.memory_space<vmem>>, vector<1x384xi32>,
    return
  }
  func.func @transform_0(%arg0: i32) -> (i32, i32) {
    %c0_i32 = arith.constant 0 : i32
    %c0_i32_0 = arith.constant 0 : i32
    return %arg0, %c0_i32 : i32, i32
  }
  func.func @transform_1(%arg0: i32) -> (i32, i32) {
    %c0_i32 = arith.constant 0 : i32
    %c0_i32_0 = arith.constant 0 : i32
    %c0_i32_1 = arith.constant 0 : i32
    return %c0_i32, %c0_i32_0 : i32, i32
  }
  func.func @transform_2(%arg0: i32) -> (i32, i32) {
    %c0_i32 = arith.constant 0 : i32
    %c0_i32_0 = arith.constant 0 : i32
    %c0_i32_1 = arith.constant 0 : i32
    return %c0_i32, %c0_i32_0 : i32, i32
  }
  func.func @transform_3(%arg0: i32) -> (i32, i32) {
    %c0_i32 = arith.constant 0 : i32
    %c0_i32_0 = arith.constant 0 : i32
    %c0_i32_1 = arith.constant 0 : i32
    return %c0_i32, %c0_i32_0 : i32, i32
  }
  func.func @transform_4(%arg0: i32) -> (i32, i32) {
    %c0_i32 = arith.constant 0 : i32
    %c0_i32_0 = arith.constant 0 : i32
    %c0_i32_1 = arith.constant 0 : i32
    return %c0_i32, %c0_i32_0 : i32, i32
  }
  func.func @transform_5(%arg0: i32) -> (i32, i32) {
    %c0_i32 = arith.constant 0 : i32
    %c0_i32_0 = arith.constant 0 : i32
    %c0_i32_1 = arith.constant 0 : i32
    return %c0_i32, %c0_i32_0 : i32, i32
  }
  func.func @transform_6(%arg0: i32) -> (i32, i32) {
    %c0_i32 = arith.constant 0 : i32
    %c0_i32_0 = arith.constant 0 : i32
    %c0_i32_1 = arith.constant 0 : i32
    return %c0_i32, %c0_i32_0 : i32, i32
  }
  func.func @transform_7(%arg0: i32) -> (i32, i32) {
    %c0_i32 = arith.constant 0 : i32
    %c0_i32_0 = arith.constant 0 : i32
    return %c0_i32, %arg0 : i32, i32
  }
}

</mosaic_0001>

<bundles_post_ra>
// kernel: tpu_custom_call.1
= control target key start
LH: loop header
LB: loop body
LE: loop exit
PB: predicated region body
PF: predicated region fallthrough
CT: control target
= control target key end

     0   :  { %vm272_vm0 = vcmask 261120   ;;  %v1194_v3 = vmov 0   ;;  %s1478_s0 = inlined_call_operand.vmem [shape: bf16[300,32], index: 0, kind: input, shape index: {}]   ;;  %s1479_s1 = inlined_call_operand.vmem [shape: bf16[64,32], index: 1, kind: input, shape index: {}]   ;;  %s1480_s2 = inlined_call_operand.vmem [shape: f32[64,1], index: 2, kind: input, shape index: {}]   ;;  %s1481_s3 = inlined_call_operand.vmem [shape: bf16[32,64], index: 3, kind: input, shape index: {}]   ;;  %s1482_s4 = inlined_call_operand.vmem [shape: f32[32,1], index: 4, kind: input, shape index: {}]   ;;  %s1483_s5 = inlined_call_operand.vmem [shape: bf16[16,32], index: 5, kind: input, shape index: {}]   ;;  %s1484_s6 = inlined_call_operand.vmem [shape: f32[16,1], index: 6, kind: input, shape index: {}]   ;;  %s1485_s7 = inlined_call_operand.hbm [shape: s32[1,384], index: 7, kind: output, shape index: {}]  }
   0x1   :  { %v1069_v0 = vld [vmem:[%s1478_s0 + $0x78] sm:$0xff]   ;;  %1067 = vset.pattern.permute.xlu0 %v1194_v3  ;;  %v1072_v5 = vld [vmem:[%s1478_s0 + $0x70] sm:$0xff]   ;;  %1068 = vset.pattern.permute.xlu1 %v1194_v3  ;;  %v1076_v10 = vld [vmem:[%s1478_s0 + $0xa8] sm:$0xff]  }
   0x2   :  { %v1070_v1 = vld [vmem:[%s1478_s0 + $0xb8] sm:$0xff]   ;;  %1040 = vmatprep.subr.msk.bf16.mxu0 %vm272_vm0, %v1069_v0  ;;  %v1073_v7 = vld [vmem:[%s1478_s0 + $0xb0] sm:$0xff]   ;;  %v1075_v12 = vld [vmem:[%s1478_s0 + $0x68] sm:$0xff]   ;;  %v349_v14 = vsel %vm272_vm0, %v1076_v10, 0 }
   0x3   :  { %v1071_v2 = vld [vmem:[%s1478_s0 + $0x38] sm:$0xff]   ;;  %1048 = vmatprep.subr.msk.bf16.mxu1 %vm272_vm0, %v1070_v1  ;;  %v355_v4 = vsel %vm272_vm0, %v1070_v1, 0  ;;  %v1074_v8 = vld [vmem:[%s1478_s0 + $0x30] sm:$0xff]   ;;  %v352_v9 = vsel %vm272_vm0, %v1073_v7, 0  ;;  %v1077_v13 = vld [vmem:[%s1478_s0 + $0x28] sm:$0xff]  }
   0x4   :  { %v307_v6 = vsel %vm272_vm0, %v1071_v2, 0  ;;  %997 = vmatpush3.bf16.xpose.msra.mxu1 %v355_v4  ;;  %v304_v11 = vsel %vm272_vm0, %v1074_v8, 0  ;;  %v1079_v15 = vld [vmem:[%s1478_s0 + $0xa0] sm:$0xff]   ;;  %v301_v16 = vsel %vm272_vm0, %v1077_v13, 0  ;;  %v1082_v21 = vld [vmem:[%s1478_s0 + $0x98] sm:$0xff]   ;;  %v42_v25 = vld [vmem:[%s1480_s2 + $0x30] sm:$0xff] }
   0x5   :  { %952 = vmatpush3.bf16.xpose.msra.mxu0 %v307_v6  ;;  %1049 = vmatprep.subr.msk.bf16.mxu1 %vm272_vm0, %v1073_v7  ;;  %v1078_v17 = vld [vmem:[%s1478_s0 + $0x60] sm:$0xff]   ;;  %v346_v20 = vsel %vm272_vm0, %v1079_v15, 0  ;;  %v1081_v23 = vld [vmem:[%s1478_s0 + $0x58] sm:$0xff]   ;;  %v343_v29 = vsel %vm272_vm0, %v1082_v21, 0  ;;  %v1084_v30 = vld [vmem:[%s1478_s0 + $0x50] sm:$0xff]  }
   0x6   :  { %1041 = vmatprep.subr.msk.bf16.mxu0 %vm272_vm0, %v1072_v5  ;;  %v1080_v18 = vld [vmem:[%s1478_s0 + $0x20] sm:$0xff]   ;;  %v1083_v24 = vld [vmem:[%s1478_s0 + $0x18] sm:$0xff]   ;;  %124 = vperm.xlu0 %1067, %v42_v25   ;;  %v1085_v31 = vld [vmem:[%s1478_s0 + $0x90] sm:$0xff]  }
   0x7   :  { %v1294_v19 = vld [vmem:[%s1479_s1] sm:$0xff]   ;;  %v298_v22 = vsel %vm272_vm0, %v1080_v18, 0  ;;  %v43_v27 = vld [vmem:[%s1480_s2 + $0x38] sm:$0xff]  ;;  %v295_v28 = vsel %vm272_vm0, %v1083_v24, 0  ;;  %v41_v32 = vld [vmem:[%s1480_s2 + $0x28] sm:$0xff] }
   0x8   :  { %967 = vmatprep.mubr.msk.bf16.mxu0 %vm272_vm0, %v1294_v19  ;;  %1012 = vmatprep.mubr.msk.bf16.mxu1 %vm272_vm0, %v1294_v19  ;;  %v40_v26 = vld [vmem:[%s1480_s2 + $0x20] sm:$0xff] }
   0x9   :  { %114 = vperm.xlu1 %1068, %v40_v26  }
   0xa   :  { %129 = vperm.xlu0 %1067, %v43_v27  }
   0xc   :  { %999 = vmatpush3.bf16.xpose.msra.mxu1 %v352_v9 }
   0xd   :  { %954 = vmatpush3.bf16.xpose.msra.mxu0 %v304_v11  ;;  %1050 = vmatprep.subr.msk.bf16.mxu1 %vm272_vm0, %v1076_v10 }
   0xe   :  { %1042 = vmatprep.subr.msk.bf16.mxu0 %vm272_vm0, %v1075_v12 }
  0x14   :  { %1001 = vmatpush3.bf16.xpose.msra.mxu1 %v349_v14 }
  0x15   :  { %956 = vmatpush3.bf16.xpose.msra.mxu0 %v301_v16  ;;  %1051 = vmatprep.subr.msk.bf16.mxu1 %vm272_vm0, %v1079_v15 }
  0x16   :  { %1043 = vmatprep.subr.msk.bf16.mxu0 %vm272_vm0, %v1078_v17 }
  0x1c   :  { %1003 = vmatpush3.bf16.xpose.msra.mxu1 %v346_v20 }
  0x1d   :  { %958 = vmatpush3.bf16.xpose.msra.mxu0 %v298_v22  ;;  %1052 = vmatprep.subr.msk.bf16.mxu1 %vm272_vm0, %v1082_v21 }
  0x1e   :  { %1044 = vmatprep.subr.msk.bf16.mxu0 %vm272_vm0, %v1081_v23 }
  0x1f   :  { %12 = vsyncpa [#allocation3], 0  ;;  %119 = vperm.xlu1 %1068, %v41_v32   ;;  %v38_v33 = vld [vmem:[%s1480_s2 + $0x10] sm:$0xff]  ;;  %v39_v34 = vld [vmem:[%s1480_s2 + $0x18] sm:$0xff]  ;;  %v340_v38 = vsel %vm272_vm0, %v1085_v31, 0  ;;  %vm569_vm1 = vcmask 523264  }
  0x20   :  { %v1086_v35 = vld [vmem:[%s1478_s0 + $0x10] sm:$0xff]   ;;  %104 = vperm.xlu0 %1067, %v38_v33   ;;  %v36_v36 = vld [vmem:[%s1480_s2] sm:$0xff]  ;;  %v37_v37 = vld [vmem:[%s1480_s2 + $0x8] sm:$0xff]  ;;  %vm1196_vm2 = vmmov 0  }
  0x21   :  { %v1088_v39 = vld [vmem:[%s1478_s0 + $0x88] sm:$0xff]   ;;  %v292_v40 = vsel %vm272_vm0, %v1086_v35, 0  ;;  %v537_v42 = vld [vmem:[%s1482_s4 + $0x10] sm:$0xff]  ;;  %v538_v43 = vld [vmem:[%s1482_s4 + $0x18] sm:$0xff] }
  0x22   :  { %v1087_v41 = vld [vmem:[%s1478_s0 + $0x48] sm:$0xff]   ;;  %v535_v45 = vld [vmem:[%s1482_s4] sm:$0xff]  ;;  %v337_v47 = vsel %vm272_vm0, %v1088_v39, 0  ;;  %v1095_v57 = vld [vmem:[%s1479_s1 + $0x10] sm:$0xff]  }
  0x23   :  { %109 = vperm.xlu1 %1068, %v39_v34   ;;  %v1089_v44 = vld [vmem:[%s1478_s0 + $0x8] sm:$0xff]   ;;  %v1091_v48 = vld [vmem:[%s1478_s0 + $0x80] sm:$0xff]   ;;  %v1096_v58 = vld [vmem:[%s1479_s1 + $0x18] sm:$0xff]  }
  0x24   :  { %1005 = vmatpush3.bf16.xpose.msra.mxu1 %v343_v29  ;;  %94 = vperm.xlu0 %1067, %v36_v36   ;;  %v536_v46 = vld [vmem:[%s1482_s4 + $0x8] sm:$0xff]  ;;  %v289_v49 = vsel %vm272_vm0, %v1089_v44, 0  ;;  %v1090_v50 = vld [vmem:[%s1478_s0 + $0x40] sm:$0xff]   ;;  %v334_v54 = vsel %vm272_vm0, %v1091_v48, 0 }
  0x25   :  { %960 = vmatpush3.bf16.xpose.msra.mxu0 %v295_v28  ;;  %1053 = vmatprep.subr.msk.bf16.mxu1 %vm272_vm0, %v1085_v31  ;;  %v698_v51 = vld [vmem:[%s1484_s6] sm:$0xff]  ;;  %v699_v52 = vld [vmem:[%s1484_s6 + $0x8] sm:$0xff] }
  0x26   :  { %1045 = vmatprep.subr.msk.bf16.mxu0 %vm272_vm0, %v1084_v30  ;;  %v1092_v53 = vld [vmem:[%s1478_s0] sm:$0xff]   ;;  %v1094_v56 = vld [vmem:[%s1479_s1 + $0x8] sm:$0xff]  }
  0x27   :  { %99 = vperm.xlu1 %1068, %v37_v37   ;;  %v286_v55 = vsel %vm272_vm0, %v1092_v53, 0  ;;  %v1420_v59 = vld [vmem:[%s1481_s3] sm:$0xff]  }
  0x28   :  { %551 = vperm.xlu0 %1067, %v537_v42  }
  0x2b   :  { %556 = vperm.xlu1 %1068, %v538_v43  }
  0x2c   :  { %1007 = vmatpush3.bf16.xpose.msra.mxu1 %v340_v38  ;;  %541 = vperm.xlu0 %1067, %v535_v45  }
  0x2d   :  { %962 = vmatpush3.bf16.xpose.msra.mxu0 %v292_v40  ;;  %1054 = vmatprep.subr.msk.bf16.mxu1 %vm272_vm0, %v1088_v39 }
  0x2e   :  { %1046 = vmatprep.subr.msk.bf16.mxu0 %vm272_vm0, %v1087_v41 }
  0x2f   :  { %546 = vperm.xlu1 %1068, %v536_v46  }
  0x30   :  { %702 = vperm.xlu0 %1067, %v698_v51  }
  0x33   :  { %707 = vperm.xlu1 %1068, %v699_v52  }
  0x34   :  { %1009 = vmatpush3.bf16.xpose.msra.mxu1 %v337_v47 }
  0x35   :  { %964 = vmatpush3.bf16.xpose.msra.mxu0 %v289_v49  ;;  %1055 = vmatprep.subr.msk.bf16.mxu1 %vm272_vm0, %v1091_v48 }
  0x36   :  { %1047 = vmatprep.subr.msk.bf16.mxu0 %vm272_vm0, %v1090_v50 }
  0x3c   :  { %1011 = vmatpush3.bf16.xpose.msra.mxu1 %v334_v54 }
  0x3d   :  { %966 = vmatpush3.bf16.xpose.msra.mxu0 %v286_v55 }
  0x43   :  { %1013 = vmatmul.mubr.msk.bf16.vlgmr.msra.gmra.mxu1 %vm272_vm0, %v1094_v56 }
  0x44   :  { %968 = vmatmul.mubr.msk.bf16.vlgmr.msra.gmra.mxu0 %vm272_vm0, %v1294_v19  ;;  %1016 = vmatprep.mubr.msk.bf16.mxu1 %vm272_vm0, %v1095_v57 }
  0x45   :  { %969 = vmatprep.mubr.msk.bf16.mxu0 %vm272_vm0, %v1094_v56 }
  0x4b   :  { %1017 = vmatmul.mubr.msk.bf16.gmra.mxu1 %vm272_vm0, %v1096_v58 }
  0x4c   :  { %970 = vmatmul.mubr.msk.bf16.gmra.mxu0 %vm272_vm0, %v1094_v56  ;;  %608 = vmatprep.mubr.bf16.mxu1 %v1194_v3 }
  0x4d   :  { %971 = vmatprep.mubr.msk.bf16.mxu0 %vm272_vm0, %v1095_v57 }
  0x54   :  { %972 = vmatmul.mubr.msk.bf16.gmra.mxu0 %vm272_vm0, %v1095_v57 }
  0x55   :  { %973 = vmatprep.mubr.msk.bf16.mxu0 %vm272_vm0, %v1096_v58 }
  0x5c   :  { %974 = vmatmul.mubr.msk.bf16.gmra.mxu0 %vm272_vm0, %v1096_v58 }
  0x5d   :  { %1028 = vmatprep.mubr.msk.bf16.mxu0 %vm569_vm1, %v1420_v59 }
  0x81   :  { %v125_v60 = vpop.permute.xlu0 %124 }
  0x84   :  { %v1424_v61 = vpop.permute.xlu1 %114 }
  0x85   :  { %v130_v63 = vpop.permute.xlu0 %129 }
  0x9a   :  { %v120_v4 = vpop.permute.xlu1 %119 }
  0x9b   :  { %v1432_v8 = vpop.permute.xlu0 %104 }
  0x9e   :  { %v110_v14 = vpop.permute.xlu1 %109 }
  0x9f   :  { %v1440_v23 = vpop.permute.xlu0 %94 }
  0xa2   :  { %v100_v27 = vpop.permute.xlu1 %99 }
 0x103   :  { %v1014_v62 = vpop.f32.mrf.mxu1 }
 0x104   :  { %v1426_v0 = vpop.f32.mrf.mxu0  ;;  %v473_v10 = vadd.f32 %v1014_v62, %v1432_v8 }
 0x105   :  { %v464_v1 = vpop.f32.mrf.mxu1 }
 0x106   :  { %v1428_v2 = vpop.f32.mrf.mxu0  ;;  %1100 = vtanh.f32 %v473_v10  ;;  %v465_v26 = vadd.f32 %v464_v1, %v1440_v23 }
 0x107   :  { %v1015_v5 = vpop.f32.mrf.mxu1  ;;  %v394_v1 = vadd.f32 %v1428_v2, %v1440_v23 }
 0x108   :  { %v1430_v6 = vpop.f32.mrf.mxu0  ;;  %v476_v18 = vadd.f32 %v1015_v5, %v110_v14  ;;  %v1098_v5 = vld [vmem:[%s1481_s3 + $0x8] sm:$0xff]  }
 0x109   :  { %v467_v7 = vpop.f32.mrf.mxu1 }
 0x10a   :  { %v1434_v9 = vpop.f32.mrf.mxu0  ;;  %v468_v28 = vadd.f32 %v467_v7, %v100_v27 }
 0x10b   :  { %v1018_v11 = vpop.f32.mrf.mxu1  ;;  %v398_v62 = vadd.f32 %v1434_v9, %v100_v27 }
 0x10c   :  { %v1437_v12 = vpop.f32.mrf.mxu0  ;;  %v489_v13 = vadd.f32 %v1018_v11, %v125_v60 }
 0x10d   :  { %v480_v15 = vpop.f32.mrf.mxu1 }
 0x10e   :  { %v403_v16 = vpop.f32.mrf.mxu0  ;;  %v481_v17 = vadd.f32 %v480_v15, %v1424_v61  ;;  %1102 = vtanh.f32 %v489_v13 }
 0x10f   :  { %v1019_v19 = vpop.f32.mrf.mxu1  ;;  %v404_v57 = vadd.f32 %v403_v16, %v1432_v8 }
 0x110   :  { %v405_v20 = vpop.f32.mrf.mxu0  ;;  %v492_v21 = vadd.f32 %v1019_v19, %v130_v63  ;;  %1104 = vtanh.f32 %v481_v17 }
 0x111   :  { %v483_v22 = vpop.f32.mrf.mxu1  ;;  %v406_v58 = vadd.f32 %v405_v20, %v110_v14 }
 0x112   :  { %1106 = vtanh.f32 %v492_v21  ;;  %v407_v24 = vpop.f32.mrf.mxu0  ;;  %v484_v25 = vadd.f32 %v483_v22, %v120_v4 }
 0x113   :  { %1108 = vtanh.f32 %v476_v18  ;;  %v1101_v33 = vpop.eup %1100  ;;  %v408_v55 = vadd.f32 %v407_v24, %v110_v14 }
 0x114   :  { %v411_v29 = vpop.f32.mrf.mxu0  ;;  %1110 = vtanh.f32 %v484_v25 }
 0x115   :  { %1112 = vtanh.f32 %v465_v26  ;;  %v412_v56 = vadd.f32 %v411_v29, %v1424_v61  ;;  %v552_v29 = vpop.permute.xlu0 %551 }
 0x116   :  { %v413_v30 = vpop.f32.mrf.mxu0  ;;  %1114 = vtanh.f32 %v468_v28  ;;  %v1195_v28 = vmov 0.0  }
 0x117   :  { %v414_v49 = vadd.f32 %v413_v30, %v1424_v61  ;;  %v396_v61 = vadd.f32 %v1430_v6, %v100_v27  ;;  %v557_v30 = vpop.permute.xlu1 %556 }
 0x118   :  { %v415_v31 = vpop.f32.mrf.mxu0 }
 0x119   :  { %v416_v52 = vadd.f32 %v415_v31, %v120_v4 }
 0x11a   :  { %v417_v32 = vpop.f32.mrf.mxu0 }
 0x11b   :  { %v1103_v35 = vpop.eup %1102  ;;  %v418_v37 = vadd.f32 %v417_v32, %v120_v4  ;;  %v392_v4 = vadd.f32 %v1426_v0, %v1440_v23 }
 0x11c   :  { %v421_v34 = vpop.f32.mrf.mxu0 }
 0x11d   :  { %v1105_v36 = vpop.eup %1104  ;;  %1116 = vtanh.f32 %v418_v37  ;;  %v422_v46 = vadd.f32 %v421_v34, %v125_v60  ;;  %v547_v37 = vpop.permute.xlu1 %546 }
 0x11e   :  { %v423_v38 = vpop.f32.mrf.mxu0 }
 0x11f   :  { %v1107_v39 = vpop.eup %1106  ;;  %v424_v40 = vadd.f32 %v423_v38, %v125_v60 }
 0x120   :  { %v1109_v41 = vpop.eup %1108  ;;  %v425_v42 = vpop.f32.mrf.mxu0  ;;  %v530_v43 = vpack.c.bf16 %v1107_v39, %v1103_v35 }
 0x121   :  { %v1111_v44 = vpop.eup %1110  ;;  %v426_v45 = vadd.f32 %v425_v42, %v130_v63  ;;  %1118 = vtanh.f32 %v424_v40  ;;  %v524_v53 = vpack.c.bf16 %v1109_v41, %v1101_v33  ;;  %v542_v35 = vpop.permute.xlu0 %541 }
 0x122   :  { %v427_v47 = vpop.f32.mrf.mxu0  ;;  %1020 = vmatprep.subr.bf16.mxu0 %v530_v43  ;;  %v527_v48 = vpack.c.bf16 %v1111_v44, %v1105_v36  ;;  %v1113_v51 = vpop.eup %1112 }
 0x123   :  { %v428_v50 = vadd.f32 %v427_v47, %v130_v63  ;;  %1021 = vmatpush3.bf16.msra.mxu0 %v530_v43  ;;  %1120 = vtanh.f32 %v426_v45  ;;  %v1115_v54 = vpop.eup %1114  ;;  %v402_v63 = vadd.f32 %v1437_v12, %v1432_v8 }
 0x124   :  { %1022 = vmatprep.subr.bf16.mxu0 %v527_v48  ;;  %v521_v60 = vpack.c.bf16 %v1115_v54, %v1113_v51 }
 0x125   :  { %1122 = vtanh.f32 %v428_v50 }
 0x126   :  { %1124 = vtanh.f32 %v422_v46 }
 0x127   :  { %1126 = vtanh.f32 %v414_v49  ;;  %1023 = vmatpush3.bf16.msra.mxu0 %v527_v48  ;;  %v1099_v49 = vld [vmem:[%s1483_s5] sm:$0xff]   ;;  %s1198_s5 = smov [#allocation2]  }
 0x128   :  { %1128 = vtanh.f32 %v416_v52  ;;  %1024 = vmatprep.subr.bf16.mxu0 %v524_v53  ;;  %s898_s15 = sshll.u32 %s1198_s5, 4  ;;  %s899_s15 = int_to_ptr.vmem [resolvable:$true] %s898_s15 }
 0x129   :  { %1130 = vtanh.f32 %v408_v55  ;;  %s1172_s16 = scalar_lea.vmem %s899_s15, 48  ;;  %s1176_s17 = scalar_lea.vmem %s899_s15, 64 }
 0x12a   :  { %1132 = vtanh.f32 %v412_v56  ;;  %v1117_v7 = vpop.eup %1116  ;;  %p1173_p0 = scmp.ne.s32.totalorder %s899_s15, %s1172_s16  ;;  %p1177_p1 = scmp.lt.s32.totalorder %s899_s15, %s899_s15 }
 0x12b   :  { %1134 = vtanh.f32 %v404_v57  ;;  %1025 = vmatpush3.bf16.msra.mxu0 %v524_v53  ;;  %p1178_p2 = scmp.lt.s32.totalorder %s1176_s17, %s1172_s16 }
 0x12c   :  { %1136 = vtanh.f32 %v406_v58  ;;  %1026 = vmatprep.subr.bf16.mxu0 %v521_v60 }
 0x12d   :  { %1138 = vtanh.f32 %v398_v62  ;;  %p1179_p3 = por %p1178_p2, %p1177_p1 }
 0x12e   :  { %1140 = vtanh.f32 %v402_v63  ;;  %v1119_v8 = vpop.eup %1118 }
 0x12f   :  { %1142 = vtanh.f32 %v394_v1  ;;  %1027 = vmatpush3.bf16.msra.mxu0 %v521_v60  ;;  %p1180_p4 = pnand %p1179_p3, %p1173_p0 }
 0x130   :  { %1144 = vtanh.f32 %v396_v61  ;;  %v1121_v2 = vpop.eup %1120  ;;  %1032 = vmatprep.subr.bf16.mxu0 %v1195_v28 }
 0x131   :  { %1146 = vtanh.f32 %v392_v4 }
 0x132   :  { %v1123_v9 = vpop.eup %1122  ;;  %1029 = vmatmul.mubr.msk.bf16.vlgmr.msra.gmra.mxu0 %vm569_vm1, %v1098_v5 }
 0x133   :  { %v1125_v6 = vpop.eup %1124  ;;  %v529_v10 = vpack.c.bf16 %v1123_v9, %v1119_v8  ;;  %1036 = vmatprep.mubr.msk.bf16.mxu0 %vm1196_vm2, %v1195_v28 }
 0x134   :  { %v1127_v11 = vpop.eup %1126  ;;  %v528_v12 = vpack.c.bf16 %v1121_v2, %v1125_v6 }
 0x135   :  { %v1129_v0 = vpop.eup %1128  ;;  %584 = vmatprep.subr.bf16.mxu1 %v529_v10  ;;  %v526_v13 = vpack.c.bf16 %v1117_v7, %v1127_v11 }
 0x136   :  { %v1131_v14 = vpop.eup %1130  ;;  %585 = vmatpush1.bf16.msra.mxu1 %v528_v12 }
 0x137   :  { %v1133_v15 = vpop.eup %1132  ;;  %586 = vmatprep.subr.bf16.mxu1 %v526_v13 }
 0x138   :  { %v1135_v16 = vpop.eup %1134  ;;  %v525_v17 = vpack.c.bf16 %v1129_v0, %v1133_v15  ;;  %v708_v15 = vpop.permute.xlu1 %707 }
 0x139   :  { %v1137_v18 = vpop.eup %1136  ;;  %v523_v19 = vpack.c.bf16 %v1131_v14, %v1135_v16  ;;  %v703_v14 = vpop.permute.xlu0 %702 }
 0x13a   :  { %v1139_v20 = vpop.eup %1138  ;;  %587 = vmatpush1.bf16.msra.mxu1 %v525_v17 }
 0x13b   :  { %v1141_v21 = vpop.eup %1140  ;;  %588 = vmatprep.subr.bf16.mxu1 %v523_v19 }
 0x13c   :  { %v1143_v22 = vpop.eup %1142  ;;  %v522_v23 = vpack.c.bf16 %v1137_v18, %v1141_v21 }
 0x13d   :  { %v1145_v24 = vpop.eup %1144  ;;  %v520_v25 = vpack.c.bf16 %v1139_v20, %v1143_v22 }
 0x13e   :  { %589 = vmatpush1.bf16.msra.mxu1 %v522_v23  ;;  %v1147_v26 = vpop.eup %1146 }
 0x13f   :  { %590 = vmatprep.subr.bf16.mxu1 %v520_v25  ;;  %v519_v27 = vpack.c.bf16 %v1145_v24, %v1147_v26  ;;  %v823_v24 = vlaneseq }
 0x141   :  { %v1469_v26 = vshrl.u32 %v823_v24, 7  ;;  %vm889_vm9 = vcmp.lt.s32.totalorder %v823_v24, 384 }
 0x142   :  { %591 = vmatpush1.bf16.msra.mxu1 %v519_v27 }
 0x145   :  { %944 = vmatmul.mubr.msk.bf16.vlgmr.msra.gmra.mxu1 %vm569_vm1, %v1420_v59 }
 0x146   :  { %618 = vmatprep.mubr.bf16.mxu1 %v1194_v3 }
 0x14d   :  { %945 = vmatmul.mubr.msk.bf16.gmra.mxu1 %vm569_vm1, %v1098_v5 }
 0x14e   :  { %750 = vmatprep.mubr.bf16.mxu1 %v1194_v3 }
 0x1f2   :  { %v1030_v31 = vpop.f32.mrf.mxu0 }
 0x1f3   :  { %v672_v32 = vadd.f32 %v1030_v31, %v552_v29  ;;  %v826_v31 = vcvt.s32.f32 %v1469_v26 }
 0x1f4   :  { %v663_v33 = vpop.f32.mrf.mxu0 }
 0x1f5   :  { %1148 = vtanh.f32 %v672_v32  ;;  %v664_v38 = vadd.f32 %v663_v33, %v542_v35 }
 0x1f6   :  { %v1031_v34 = vpop.f32.mrf.mxu0 }
 0x1f7   :  { %v675_v36 = vadd.f32 %v1031_v34, %v557_v30 }
 0x1f8   :  { %v666_v59 = vpop.f32.mrf.mxu0 }
 0x1f9   :  { %1150 = vtanh.f32 %v675_v36  ;;  %v667_v39 = vadd.f32 %v666_v59, %v547_v37 }
 0x1fb   :  { %1152 = vtanh.f32 %v667_v39 }
 0x1fc   :  { %1154 = vtanh.f32 %v664_v38 }
 0x202   :  { %v1149_v3 = vpop.eup %1148 }
 0x205   :  { %v610_v40 = vpop.f32.mrf.mxu1 }
 0x206   :  { %v1151_v41 = vpop.eup %1150  ;;  %v611_v63 = vadd.f32 %v610_v40, %v542_v35 }
 0x207   :  { %v612_v42 = vpop.f32.mrf.mxu1  ;;  %v695_v43 = vpack.c.bf16 %v1151_v41, %v1149_v3 }
 0x208   :  { %v1153_v44 = vpop.eup %1152  ;;  %v613_v58 = vadd.f32 %v612_v42, %v542_v35 }
 0x209   :  { %v614_v45 = vpop.f32.mrf.mxu1  ;;  %1033 = vmatpush3.bf16.msra.mxu0 %v695_v43  ;;  %v1155_v46 = vpop.eup %1154 }
 0x20a   :  { %1034 = vmatprep.subr.bf16.mxu0 %v1195_v28  ;;  %v692_v48 = vpack.c.bf16 %v1153_v44, %v1155_v46  ;;  %v615_v62 = vadd.f32 %v614_v45, %v547_v37  ;;  %v825_v28 = vadd.s32 8, %v1469_v26 }
 0x20b   :  { %v616_v47 = vpop.f32.mrf.mxu1 }
 0x20c   :  { %v617_v51 = vadd.f32 %v616_v47, %v547_v37  ;;  %v827_v32 = vcvt.s32.f32 %v825_v28 }
 0x20d   :  { %v620_v50 = vpop.f32.mrf.mxu1  ;;  %1035 = vmatpush3.bf16.msra.mxu0 %v692_v48 }
 0x20e   :  { %1156 = vtanh.f32 %v617_v51  ;;  %v621_v56 = vadd.f32 %v620_v50, %v552_v29 }
 0x20f   :  { %v622_v52 = vpop.f32.mrf.mxu1 }
 0x210   :  { %v623_v53 = vadd.f32 %v622_v52, %v552_v29  ;;  %1037 = vmatmul.mubr.msk.bf16.vlgmr.msra.gmra.mxu0 %vm272_vm0, %v1099_v49 }
 0x211   :  { %v624_v54 = vpop.f32.mrf.mxu1 }
 0x212   :  { %v625_v55 = vadd.f32 %v624_v54, %v557_v30  ;;  %1158 = vtanh.f32 %v623_v53 }
 0x213   :  { %v626_v57 = vpop.f32.mrf.mxu1 }
 0x214   :  { %v627_v60 = vadd.f32 %v626_v57, %v557_v30  ;;  %1160 = vtanh.f32 %v625_v55 }
 0x216   :  { %1162 = vtanh.f32 %v627_v60 }
 0x217   :  { %1164 = vtanh.f32 %v621_v56 }
 0x218   :  { %1166 = vtanh.f32 %v613_v58 }
 0x219   :  { %1168 = vtanh.f32 %v615_v62 }
 0x21a   :  { %1170 = vtanh.f32 %v611_v63 }
 0x21b   :  { %v1157_v1 = vpop.eup %1156 }
 0x21f   :  { %v1159_v61 = vpop.eup %1158 }
 0x221   :  { %v1161_v4 = vpop.eup %1160 }
 0x223   :  { %v1163_v5 = vpop.eup %1162 }
 0x224   :  { %v1165_v7 = vpop.eup %1164  ;;  %v694_v8 = vpack.c.bf16 %v1163_v5, %v1159_v61 }
 0x225   :  { %v1167_v2 = vpop.eup %1166  ;;  %v693_v9 = vpack.c.bf16 %v1161_v4, %v1165_v7 }
 0x226   :  { %v1169_v6 = vpop.eup %1168  ;;  %730 = vmatprep.subr.bf16.mxu1 %v694_v8  ;;  %v691_v10 = vpack.c.bf16 %v1157_v1, %v1167_v2 }
 0x227   :  { %731 = vmatpush1.bf16.msra.mxu1 %v693_v9  ;;  %v1171_v11 = vpop.eup %1170 }
 0x228   :  { %732 = vmatprep.subr.bf16.mxu1 %v691_v10  ;;  %v690_v12 = vpack.c.bf16 %v1169_v6, %v1171_v11 }
 0x22b   :  { %733 = vmatpush1.bf16.msra.mxu1 %v690_v12 }
 0x22e   :  { %949 = vmatmul.mubr.msk.bf16.vlgmr.msra.gmra.mxu1 %vm272_vm0, %v1099_v49 }
 0x2d0   :  { %v795_v0 = vpop.f32.mrf.mxu0 }
 0x2d1   :  { %v796_v17 = vadd.f32 %v795_v0, %v703_v14 }
 0x2d2   :  { %v1038_v13 = vpop.f32.mrf.mxu0 }
 0x2d4   :  { %v798_v16 = vpop.f32.mrf.mxu0 }
 0x2d5   :  { %v799_v18 = vadd.f32 %v798_v16, %v708_v15 }
 0x2d6   :  { %v1039_v19 = vpop.f32.mrf.mxu0 }
 0x2d7   :  { %v816_v20 = vmax.f32 %v796_v17, %v799_v18 }
 0x2d9   :  { %v817_v21 = vrot.slane %v816_v20, 4 }
 0x2db   :  { %v818_v22 = vmax.f32 %v816_v20, %v817_v21 }
 0x2dd   :  { %v819_v23 = vrot.slane %v818_v22, 2 }
 0x2df   :  { %v820_v25 = vmax.f32 %v818_v22, %v819_v23 }
 0x2e1   :  { %v821_v27 = vrot.slane %v820_v25, 1 }
 0x2e3   :  { %v822_v29 = vmax.f32 %v820_v25, %v821_v27 }
 0x2e5   :  { %vm830_vm3 = vcmp.eq.f32.partialorder %v796_v17, %v822_v29  ;;  %vm833_vm4 = vcmp.eq.f32.partialorder %v799_v18, %v822_v29 }
 0x2e6   :  { %v836_v37 = vsel %vm830_vm3, %v826_v31, 16.0  ;;  %v839_v59 = vsel %vm833_vm4, %v827_v32, 16.0 }
 0x2e7   :  { %v854_v41 = vmin.f32 %v836_v37, %v839_v59 }
 0x2e9   :  { %v855_v46 = vrot.slane %v854_v41, 4 }
 0x2eb   :  { %v856_v51 = vmin.f32 %v854_v41, %v855_v46 }
 0x2ed   :  { %v857_v56 = vrot.slane %v856_v51, 2 }
 0x2ee   :  { %v752_v30 = vpop.f32.mrf.mxu1 }
 0x2ef   :  { %v753_v35 = vadd.f32 %v752_v30, %v703_v14  ;;  %v858_v61 = vmin.f32 %v856_v51, %v857_v56 }
 0x2f0   :  { %v754_v33 = vpop.f32.mrf.mxu1 }
 0x2f1   :  { %v755_v39 = vadd.f32 %v754_v33, %v703_v14  ;;  %v859_v2 = vrot.slane %v858_v61, 1  ;;  %v1197_v14 = vmov 1966171168  }
 0x2f2   :  { %v756_v34 = vpop.f32.mrf.mxu1 }
 0x2f3   :  { %v757_v36 = vadd.f32 %v756_v34, %v708_v15  ;;  %v860_v12 = vmin.f32 %v858_v61, %v859_v2 }
 0x2f4   :  { %v758_v38 = vpop.f32.mrf.mxu1 }
 0x2f5   :  { %v802_v3 = vmax.f32 %v753_v35, %v757_v36  ;;  %v759_v40 = vadd.f32 %v758_v38, %v708_v15  ;;  %v866_v15 = vunpack.c.l.s4 %v1197_v14  ;;  %v1060_v20 = vtrunc.f32 %v860_v12 }
 0x2f7   :  { %v803_v42 = vrot.slane %v802_v3, 4  ;;  %v809_v43 = vmax.f32 %v755_v39, %v759_v40  ;;  %v867_v21 = vunpack.c.0.s8 %v866_v15  ;;  %v1061_v27 = vcvt.f32.s32 %v1060_v20 }
 0x2f9   :  { %v804_v44 = vmax.f32 %v802_v3, %v803_v42  ;;  %v810_v45 = vrot.slane %v809_v43, 4  ;;  %v870_v28 = vsub.s32 %v867_v21, %v1469_v26 }
 0x2fb   :  { %v805_v47 = vrot.slane %v804_v44, 2  ;;  %v811_v48 = vmax.f32 %v809_v43, %v810_v45 }
 0x2fd   :  { %v806_v49 = vmax.f32 %v804_v44, %v805_v47  ;;  %v812_v50 = vrot.slane %v811_v48, 2 }
 0x2ff   :  { %v807_v52 = vrot.slane %v806_v49, 1  ;;  %v813_v53 = vmax.f32 %v811_v48, %v812_v50 }
 0x301   :  { %v808_v54 = vmax.f32 %v806_v49, %v807_v52  ;;  %v814_v55 = vrot.slane %v813_v53, 1 }
 0x303   :  { %vm828_vm5 = vcmp.eq.f32.partialorder %v753_v35, %v808_v54  ;;  %vm831_vm6 = vcmp.eq.f32.partialorder %v757_v36, %v808_v54  ;;  %v815_v57 = vmax.f32 %v813_v53, %v814_v55 }
 0x304   :  { %v834_v58 = vsel %vm828_vm5, %v826_v31, 16.0  ;;  %v837_v60 = vsel %vm831_vm6, %v827_v32, 16.0 }
 0x305   :  { %v840_v62 = vmin.f32 %v834_v58, %v837_v60  ;;  %vm829_vm7 = vcmp.eq.f32.partialorder %v755_v39, %v815_v57  ;;  %vm832_vm8 = vcmp.eq.f32.partialorder %v759_v40, %v815_v57 }
 0x306   :  { %v835_v63 = vsel %vm829_vm7, %v826_v31, 16.0  ;;  %v838_v1 = vsel %vm832_vm8, %v827_v32, 16.0  ;;  %v878_v31 = vrot.slane %v1061_v27, %v870_v28 }
 0x307   :  { %v841_v4 = vrot.slane %v840_v62, 4  ;;  %v847_v5 = vmin.f32 %v835_v63, %v838_v1 }
 0x309   :  { %v842_v7 = vmin.f32 %v840_v62, %v841_v4  ;;  %v848_v8 = vrot.slane %v847_v5, 4 }
 0x30b   :  { %v843_v9 = vrot.slane %v842_v7, 2  ;;  %v849_v6 = vmin.f32 %v847_v5, %v848_v8 }
 0x30d   :  { %v844_v10 = vmin.f32 %v842_v7, %v843_v9  ;;  %v850_v11 = vrot.slane %v849_v6, 2 }
 0x30f   :  { %v845_v0 = vrot.slane %v844_v10, 1  ;;  %v851_v13 = vmin.f32 %v849_v6, %v850_v11 }
 0x311   :  { %v846_v16 = vmin.f32 %v844_v10, %v845_v0  ;;  %v852_v17 = vrot.slane %v851_v13, 1 }
 0x313   :  { %v1056_v18 = vtrunc.f32 %v846_v16  ;;  %v853_v19 = vmin.f32 %v851_v13, %v852_v17 }
 0x315   :  { %v1058_v22 = vtrunc.f32 %v853_v19  ;;  %v1057_v23 = vcvt.f32.s32 %v1056_v18 }
 0x317   :  { %v1059_v25 = vcvt.f32.s32 %v1058_v22 }
 0x319   :  { %v864_v29 = vcombine.low %v1057_v23, %v1059_v25 }
 0x31b   :  { %v871_v30 = vrot.slane %v864_v29, %v870_v28 }
 0x31d   :  { %v879_v32 = vcombine.low %v871_v30, %v878_v31 }
 0x31f   :  { %v886_v33 = vrot.slane %v879_v32, %v870_v28 }
 0x321   :  { %891 = vst.msk [vmem:[#allocation2] sm:$0x7] %vm889_vm9, %v886_v33 }
 0x322   :  { %1183 = shalt.err (!%p1180_p4)
}
 0x323   :  { %901 = dma.vmem_to_hbm [thread:$0]  %s899_s15, 48, %s1485_s7, [#allocation3]  }
 0x324   :  { %1192 = dma.done.wait [#allocation3], 48  }
 0x325   :  { %1193 = vsyncadd [#allocation3], 4294967248 }
 0x326   :  { %905 = vsyncpa [#allocation3], 1 }

</bundles_post_ra>
